<compile_context>
chip_gen: v7x
topology: tpu7x:2x2x1
jax: 0.10.0
libtpu: 0.0.40
codegen_flags: <defaults>
</compile_context>

<pallas_src>
import jax
import jax.numpy as jnp
from jax.experimental import pallas as pl
from jax.experimental.pallas import tpu as pltpu


def _round_up(n: int, m: int) -> int:
    return ((n + m - 1) // m) * m


def _mlp_kernel(x_ref, w1_ref, b1_ref, w2_ref, b2_ref, o_ref):
    # x_ref : (TILE_B, 16)   input rows for this tile
    # w1_ref: (8, 16)        fc[0].weight, PyTorch (out, in) orientation
    # b1_ref: (8, 1)         fc[0].bias as a column
    # w2_ref: (8, 1)         fc[2].weight as a column
    # b2_ref: (1, 1)  SMEM   fc[2].bias scalar
    # o_ref : (1, 1, TILE_B) lane-dense output row for this tile
    x = x_ref[...]

    # Layer 1 on the MXU, computed transposed so the batch maps to lanes:
    #   h_t[o, b] = sum_f W1[o, f] * x[b, f]   ->  (8, TILE_B)
    h_t = jax.lax.dot_general(
        w1_ref[...], x,
        dimension_numbers=(((1,), (1,)), ((), ())),
        preferred_element_type=jnp.float32,
    )
    h_t = h_t + b1_ref[...]                     # (8, 1) broadcast over lanes
    h_t = jnp.maximum(h_t, 0.01 * h_t)          # LeakyReLU, PyTorch default slope

    # Layer 2 as an elementwise multiply + sublane reduction (VPU/XLU, MXU idle):
    #   out[b] = sum_o h_t[o, b] * w2[o] + b2
    out = jnp.sum(h_t * w2_ref[...], axis=0, keepdims=True)    # (1, TILE_B)
    out = out + b2_ref[0, 0]                                    # SMEM scalar bias

    o_ref[0] = out.astype(o_ref.dtype)          # dense (unmasked) lane store


def concise_machine_forward(x, w1, b1, w2, b2, *, tile_b=16384):
    """Forward pass of ConciseMachine.

    x : (B, 16) float32
    w1: (8, 16) float32   (PyTorch fc[0].weight, (out, in))
    b1: (8,)    float32
    w2: (1, 8)  float32   (PyTorch fc[2].weight)
    b2: (1,)    float32
    returns (B, 1) float32
    """
    B, F = x.shape
    assert F == 16, "ConciseMachine expects 16 input features"

    # Avoid a wrapper-side copy of x when it is already f32 (the common case).
    if x.dtype != jnp.float32:
        x = x.astype(jnp.float32)

    # --- Tile selection ------------------------------------------------------
    # Small batches: a single block equal to the full array (no padding, no
    # partial blocks; block dims equal to the array dims are always legal).
    # Large batches: lane-aligned (multiple-of-128) tiles, capped at ceil(B/2)
    # so there are >= 2 grid steps for megacore, and at tile_b so two input
    # buffers (padded to 128 lanes => tb*512 B each) stay within the VMEM budget.
    tile_b = max(128, (int(tile_b) // 128) * 128)
    if B <= 256:
        tb = B
    else:
        tb = min(tile_b, _round_up(pl.cdiv(B, 2), 128))   # always <= B here
    num_tiles = pl.cdiv(B, tb)
    Bp = num_tiles * tb   # output is padded to whole tiles; tail rows sliced off

    w1f = w1.astype(jnp.float32).reshape(8, 16)          # (8, 16)
    b1c = b1.astype(jnp.float32).reshape(8, 1)           # (8, 1)
    w2c = w2.astype(jnp.float32).reshape(8, 1)           # (8, 1)
    b2s = b2.astype(jnp.float32).reshape(1, 1)           # (1, 1) SMEM scalar

    # Real in-VMEM footprint of a streamed (tb, 16) f32 block is tb*512 B
    # (16 -> 128 lane padding), double-buffered; plus output buffers and slack.
    vmem_limit = max(32 << 20, 2 * tb * 128 * 4 + 2 * tb * 4 + (4 << 20))

    flops = 2 * B * 16 * 8 + 6 * B * 8
    bytes_accessed = B * 16 * 4 + B * 4 + (w1f.size + 8 + 8 + 1) * 4

    out3 = pl.pallas_call(
        _mlp_kernel,
        out_shape=jax.ShapeDtypeStruct((num_tiles, 1, tb), jnp.float32),
        grid=(num_tiles,),
        in_specs=[
            # x streamed per tile; default double-buffered.  The last block may be
            # partial (grid = cdiv(B, tb)); out-of-range rows are unspecified and
            # their outputs are discarded below.
            pl.BlockSpec((tb, 16), lambda i: (i, 0)),
            pl.BlockSpec((8, 16), lambda i: (0, 0)),            # w1: VMEM-resident
            pl.BlockSpec((8, 1), lambda i: (0, 0)),             # b1: VMEM-resident
            pl.BlockSpec((8, 1), lambda i: (0, 0)),             # w2: VMEM-resident
            pl.BlockSpec(memory_space=pltpu.MemorySpace.SMEM),  # b2: SMEM scalar
        ],
        out_specs=pl.BlockSpec((1, 1, tb), lambda i: (i, 0, 0)),
        compiler_params=pltpu.CompilerParams(
            dimension_semantics=("parallel",),     # shardable across v7x's 2 TCs
            vmem_limit_bytes=int(vmem_limit),
        ),
        cost_estimate=pl.CostEstimate(
            flops=flops, transcendentals=0, bytes_accessed=bytes_accessed),
    )(x, w1f, b1c, w2c, b2s)

    # (num_tiles, 1, tb) row-major == batch order; drop padded tail rows.
    return out3.reshape(Bp, 1)[:B]


if __name__ == "__main__":
    key = jax.random.PRNGKey(0)
    k_x, k_w1, k_b1, k_w2, k_b2, k_x2 = jax.random.split(key, 6)

    # Deterministic params in PyTorch Linear shapes: weight (out, in), bias (out,)
    w1 = jax.random.normal(k_w1, (8, 16), jnp.float32) * 0.1   # fc[0].weight
    b1 = jax.random.normal(k_b1, (8,), jnp.float32) * 0.1      # fc[0].bias
    w2 = jax.random.normal(k_w2, (1, 8), jnp.float32) * 0.1    # fc[2].weight
    b2 = jax.random.normal(k_b2, (1,), jnp.float32) * 0.1      # fc[2].bias

    def ref_fwd(xx):
        # Pure-JAX reference (PyTorch semantics: y = x @ W.T + b, LeakyReLU 0.01)
        h = xx @ w1.T + b1
        h = jnp.where(h > 0, h, 0.01 * h)
        return h @ w2.T + b2

    # Case 1: small batch (single full-array block), matches the module's natural use.
    B = 8
    x = jax.random.normal(k_x, (B, 16), jnp.float32)
    out = jax.block_until_ready(concise_machine_forward(x, w1, b1, w2, b2))
    assert out.shape == (B, 1)
    assert jnp.allclose(out, ref_fwd(x), atol=1e-5, rtol=1e-5), "mismatch (B=8)"

    # Case 2: multi-tile batch with a partial last block (exercises the cdiv grid
    # path that replaced the wrapper-side jnp.pad).
    B2 = 300
    x2 = jax.random.normal(k_x2, (B2, 16), jnp.float32)
    out2 = jax.block_until_ready(concise_machine_forward(x2, w1, b1, w2, b2))
    assert out2.shape == (B2, 1)
    assert jnp.allclose(out2, ref_fwd(x2), atol=1e-5, rtol=1e-5), "mismatch (B=300)"

    print("KERNEL_OK")
</pallas_src>

<mosaic_0001>
module attributes {stable_mosaic.version = 11 : i64} {
  func.func @_mlp_kernel(%arg0: i32, %arg1: memref<8x16xf32, #tpu.memory_space<vmem>>, %arg2: memref<8x16xf32, #tpu.memory_space<vmem>>, %arg3: memref<8x1xf32, #tpu.memory_space<vmem>>, %arg4: memref<8x1xf32, #tpu.memory_space<vmem>>, %arg5: memref<1x1xf32, #tpu.memory_space<smem>>, %arg6: memref<1x1x8xf32, #tpu.memory_space<vmem>>) attributes {dimension_semantics = [#tpu.dimension_semantics<parallel>], iteration_bounds = array<i64: 1>, scalar_prefetch = 0 : i64, scratch_operands = 0 : i64, tpu.core_type = #tpu.core_type<tc>, window_params = [{transform_indices = @transform_0, window_bounds = array<i64: 8, 16>}, {pipeline_mode = #tpu.pipeline_mode<synchronous>, transform_indices = @transform_1, window_bounds = array<i64: 8, 16>}, {pipeline_mode = #tpu.pipeline_mode<synchronous>, transform_indices = @transform_2, window_bounds = array<i64: 8, 1>}, {pipeline_mode = #tpu.pipeline_mode<synchronous>, transform_indices = @transform_3, window_bounds = array<i64: 8, 1>}, {transform_indices = @transform_4, window_bounds = array<i64: 1, 1>}, {transform_indices = @transform_5, window_bounds = array<i64: 1, 1, 8>}]} {
    %c0 = arith.constant 0 : index
    %c0_0 = arith.constant 0 : index
    %0 = vector.load %arg1[%c0, %c0_0] : memref<8x16xf32, #tpu.memory_space<vmem>>, vector<8x16xf32>
    %c0_1 = arith.constant 0 : index
    %c0_2 = arith.constant 0 : index
    %1 = vector.load %arg2[%c0_1, %c0_2] : memref<8x16xf32, #tpu.memory_space<vmem>>, vector<8x16xf32>
    %cst = arith.constant dense<0.000000e+00> : vector<8x8xf32>
    %2 = tpu.matmul %1, %0, %cst {dimension_numbers = #tpu.dot_dimension_numbers<[1], [1], [0], [0], [0, 0, 1, 0], [], []>} : vector<8x16xf32>, vector<8x16xf32>, vector<8x8xf32> -> vector<8x8xf32>
    %c0_3 = arith.constant 0 : index
    %c0_4 = arith.constant 0 : index
    %3 = vector.load %arg3[%c0_3, %c0_4] : memref<8x1xf32, #tpu.memory_space<vmem>>, vector<8x1xf32>
    %4 = vector.broadcast %3 : vector<8x1xf32> to vector<8x8xf32>
    %5 = arith.addf %2, %4 : vector<8x8xf32>
    %cst_5 = arith.constant 0.00999999977 : f32
    %6 = vector.broadcast %cst_5 : f32 to vector<8x8xf32>
    %7 = arith.mulf %6, %5 : vector<8x8xf32>
    %8 = arith.maximumf %5, %7 : vector<8x8xf32>
    %c0_6 = arith.constant 0 : index
    %c0_7 = arith.constant 0 : index
    %9 = vector.load %arg4[%c0_6, %c0_7] : memref<8x1xf32, #tpu.memory_space<vmem>>, vector<8x1xf32>
    %10 = vector.broadcast %9 : vector<8x1xf32> to vector<8x8xf32>
    %11 = arith.mulf %8, %10 : vector<8x8xf32>
    %cst_8 = arith.constant dense<0.000000e+00> : vector<8xf32>
    %12 = vector.multi_reduction <add>, %11, %cst_8 [0] : vector<8x8xf32> to vector<8xf32>
    %13 = vector.shape_cast %12 : vector<8xf32> to vector<1x8xf32>
    %c0_9 = arith.constant 0 : index
    %c0_10 = arith.constant 0 : index
    %14 = memref.load %arg5[%c0_9, %c0_10] : memref<1x1xf32, #tpu.memory_space<smem>>
    %15 = vector.broadcast %14 : f32 to vector<1x8xf32>
    %16 = arith.addf %13, %15 : vector<1x8xf32>
    %c0_11 = arith.constant 0 : index
    %c0_12 = arith.constant 0 : index
    %c0_13 = arith.constant 0 : index
    %17 = vector.load %arg6[%c0_11, %c0_12, %c0_13] : memref<1x1x8xf32, #tpu.memory_space<vmem>>, vector<1x1x8xf32>
    %18 = vector.shape_cast %17 : vector<1x1x8xf32> to vector<1x8xf32>
    %19 = vector.shape_cast %16 : vector<1x8xf32> to vector<1x1x8xf32>
    tpu.vector_store %arg6[%c0_11, %c0_12, %c0_13], %19 {strides = array<i32>} : memref<1x1x8xf32, #tpu.memory_space<vmem>>, vector<1x1x8xf32>,
    return
  }
  func.func @transform_0(%arg0: i32) -> (i32, i32) {
    %c0_i32 = arith.constant 0 : i32
    %c0_i32_0 = arith.constant 0 : i32
    return %arg0, %c0_i32 : i32, i32
  }
  func.func @transform_1(%arg0: i32) -> (i32, i32) {
    %c0_i32 = arith.constant 0 : i32
    %c0_i32_0 = arith.constant 0 : i32
    %c0_i32_1 = arith.constant 0 : i32
    return %c0_i32, %c0_i32_0 : i32, i32
  }
  func.func @transform_2(%arg0: i32) -> (i32, i32) {
    %c0_i32 = arith.constant 0 : i32
    %c0_i32_0 = arith.constant 0 : i32
    %c0_i32_1 = arith.constant 0 : i32
    return %c0_i32, %c0_i32_0 : i32, i32
  }
  func.func @transform_3(%arg0: i32) -> (i32, i32) {
    %c0_i32 = arith.constant 0 : i32
    %c0_i32_0 = arith.constant 0 : i32
    %c0_i32_1 = arith.constant 0 : i32
    return %c0_i32, %c0_i32_0 : i32, i32
  }
  func.func @transform_4(%arg0: i32) -> (i32, i32) {
    %c0_i32 = arith.constant 0 : i32
    %c0_i32_0 = arith.constant 0 : i32
    %c0_i32_1 = arith.constant 0 : i32
    return %c0_i32, %c0_i32_0 : i32, i32
  }
  func.func @transform_5(%arg0: i32) -> (i32, i32, i32) {
    %c0_i32 = arith.constant 0 : i32
    %c0_i32_0 = arith.constant 0 : i32
    %c0_i32_1 = arith.constant 0 : i32
    return %arg0, %c0_i32, %c0_i32_0 : i32, i32, i32
  }
}

</mosaic_0001>

<bundles_post_ra>
// kernel: tpu_custom_call.1
= control target key start
LH: loop header
LB: loop body
LE: loop exit
PB: predicated region body
PF: predicated region fallthrough
CT: control target
= control target key end

     0   :  { %vm30_vm0 = vcmask 130048   ;;  %v181_v1 = vmov 0.0   ;;  %vm182_vm1 = vmmov 0   ;;  %s242_s0 = inlined_call_operand.vmem [shape: f32[8,16], index: 0, kind: input, shape index: {}]   ;;  %s243_s1 = inlined_call_operand.vmem [shape: f32[8,16], index: 1, kind: input, shape index: {}]   ;;  %s244_s2 = inlined_call_operand.vmem [shape: f32[8,1], index: 2, kind: input, shape index: {}]   ;;  %s245_s3 = inlined_call_operand.vmem [shape: f32[8,1], index: 3, kind: input, shape index: {}]   ;;  %s246_s4 = inlined_call_operand.<no memory space> [shape: f32[1,1], index: 4, kind: input, shape index: {}]   ;;  %s247_s5 = inlined_call_operand.hbm [shape: f32[1,1,8], index: 5, kind: output, shape index: {}]  }
   0x1   :  { %v22_v0 = vld [vmem:[%s242_s0] sm:$0xff]  ;;  %147 = vmatprep.subr.mxu0 %v181_v1  ;;  %149 = vmatprep.mubr.msk.f32.mxu0 %vm182_vm1, %v181_v1 }
   0x2   :  { %v24_v2 = vld [vmem:[%s244_s2] sm:$0xff] }
   0x3   :  { %11 = vsyncpa [#allocation4], 0  ;;  %148 = vmatpush3.xpose.msk.msra.mxu0 %vm30_vm0, %v22_v0  ;;  %v23_v3 = vld [vmem:[%s243_s1] sm:$0xff]  ;;  %v183_v4 = vmov 0   ;;  %vm116_vm2 = vcmask 64512   ;;  %v125_v20 = vstv %s246_s4  ;;  %vm127_vm3 = vcmask 57344  }
   0x4   :  { %156 = vset.pattern.permute.xlu0 %v183_v4  ;;  %v109_v5 = vld [vmem:[%s245_s3] sm:$0xff]  ;;  %s184_s3 = smov [#allocation3]  }
   0x5   :  { %27 = vperm.xlu0 %156, %v24_v2   ;;  %s135_s25 = sshll.u32 %s184_s3, 4  ;;  %s136_s25 = int_to_ptr.vmem [resolvable:$true] %s135_s25 }
   0x6   :  { %150 = vmatmul.mubr.msk.f32.vlgmr.msra.gmra.mrb[0].mxu0 %vm30_vm0, %v23_v3  ;;  %s157_s26 = scalar_lea.vmem %s136_s25, 16  ;;  %s161_s27 = scalar_lea.vmem %s136_s25, 32 }
   0x7   :  { %p158_p0 = scmp.ne.s32.totalorder %s136_s25, %s157_s26  ;;  %p162_p1 = scmp.lt.s32.totalorder %s136_s25, %s136_s25 }
   0x8   :  { %p163_p2 = scmp.lt.s32.totalorder %s161_s27, %s157_s26 }
   0x9   :  { %112 = vperm.xlu0 %156, %v109_v5  }
   0xa   :  { %p164_p3 = por %p163_p2, %p162_p1 }
   0xc   :  { %p165_p4 = pnand %p164_p3, %p158_p0 }
  0x84   :  { %v28_v6 = vpop.permute.xlu0 %27 }
  0x88   :  { %v113_v12 = vpop.permute.xlu0 %112 }
  0xd9   :  { %v103_v7 = vpop.f32.mrb[0].mxu0 }
  0xda   :  { %v104_v8 = vadd.f32 %v103_v7, %v28_v6  ;;  %v151_v9 = vpop.f32.mrb[1].mxu0 }
  0xdc   :  { %v107_v10 = vmul.f32 0.01, %v104_v8 }
  0xde   :  { %v108_v11 = vmax.f32 %v104_v8, %v107_v10 }
  0xe0   :  { %v115_v13 = vmul.f32 %v113_v12, %v108_v11 }
  0xe2   :  { %v117_v14 = vsel %vm116_vm2, %v115_v13, 0.0 }
  0xe3   :  { %v118_v15 = vrot.slane %v117_v14, 4 }
  0xe5   :  { %v119_v16 = vadd.f32 %v118_v15, %v117_v14 }
  0xe7   :  { %v120_v17 = vrot.slane %v119_v16, 2 }
  0xe9   :  { %v121_v18 = vadd.f32 %v120_v17, %v119_v16 }
  0xeb   :  { %v122_v19 = vrot.slane %v121_v18, 1 }
  0xed   :  { %v123_v21 = vadd.f32 %v122_v19, %v121_v18 }
  0xef   :  { %v126_v22 = vadd.f32 %v125_v20, %v123_v21 }
  0xf1   :  { %128 = vst.msk [vmem:[#allocation3] sm:$0x1] %vm127_vm3, %v126_v22 }
  0xf2   :  { %168 = shalt.err (!%p165_p4)
}
  0xf3   :  { %s169_s30 = scalar_lea.hbm %s247_s5, 16 }
  0xf4   :  { %p170_p5 = scmp.ne.s32.totalorder %s247_s5, %s169_s30  ;;  %p173_p6 = scmp.lt.u32.totalorder %s169_s30, %s247_s5 }
  0xf6   :  { %p175_p7 = pnand %p173_p6, %p170_p5 }
  0xf8   :  { %178 = shalt.err (!%p175_p7)
}
  0xf9   :  { %138 = dma.vmem_to_hbm [thread:$0]  %s136_s25, 16, %s247_s5, [#allocation4]  }
  0xfa   :  { %179 = dma.done.wait [#allocation4], 16  }
  0xfb   :  { %180 = vsyncadd [#allocation4], 4294967280 }
  0xfc   :  { %142 = vsyncpa [#allocation4], 1 }

</bundles_post_ra>
